<compile_context>
chip_gen: v6e
topology: v6e:2x2x1
jax: 0.10.0
libtpu: 0.0.40
codegen_flags: <defaults>
</compile_context>

<pallas_src>
import functools

import jax
import jax.numpy as jnp
import numpy as np
from jax import lax
from jax.experimental import pallas as pl
from jax.experimental.pallas import tpu as pltpu

LANE = 128
MLP_PAD = 512                      # inter-layer MLP padding (lane-dense tiles)
PRED_HIDDEN_DIMS = [4600, 4000, 3600, 3000, 2400, 1800, 1300, 1000, 650]


def _round_up(n, m=LANE):
    return ((n + m - 1) // m) * m


def _vmem_budget():
    """Generation-aware scoped-VMEM budget (128 MiB v5e/v6e, 64 MiB v7x)."""
    try:
        cap = int(pltpu.get_tpu_info().vmem_capacity_bytes)
    except Exception:
        cap = 64 * 1024 * 1024          # conservative fallback, valid everywhere
    return max(32 * 1024 * 1024, (cap * 3) // 4)


def _pad2d(x, rows, cols):
    return jnp.pad(x, ((0, rows - x.shape[0]), (0, cols - x.shape[1])))


def _pick_tm(mp):
    # cap TM at 128: MXU-shaped and keeps per-block footprint v7x-safe at Kp~4.6k
    if mp <= 128:
        return mp
    for t in (128, 64, 32, 16, 8):
        if mp % t == 0:
            return t
    return 8


def _pick_tn_small(np_):
    for t in (512, 384, 256, 128):
        if np_ % t == 0:
            return t
    return 128


def _pick_tn_mlp(np_, kp, budget):
    """Largest lane-dense output tile whose double-buffered footprint fits."""
    tm = 128                             # conservative (actual TM is usually 8)
    for tn in (1024, 512, 256, 128):
        if np_ % tn:
            continue
        need = 2 * (tm * kp * 4 + kp * tn * 2 + tn * 4 + tm * tn * 4) + (2 << 20)
        if need <= budget:
            return tn
    return 128


# ------------------------- gate-packed weight helpers -------------------------
def _pack_gate_weights(w, in_dim_p, hp):
    """w: (3H, in_dim) torch layout -> (in_dim_p, 3*hp), gate g at lane offset
    g*hp.  Padded rows/columns are exactly zero."""
    h = w.shape[0] // 3
    in_dim = w.shape[1]
    out = jnp.zeros((in_dim_p, 3 * hp), jnp.float32)
    for g in range(3):
        out = out.at[:in_dim, g * hp:g * hp + h].set(w[g * h:(g + 1) * h, :].T)
    return out


def _pack_gate_bias(b, hp):
    h = b.shape[0] // 3
    out = jnp.zeros((1, 3 * hp), jnp.float32)
    for g in range(3):
        out = out.at[0, g * hp:g * hp + h].set(b[g * h:(g + 1) * h])
    return out


# --------------------- one-time parameter preprocessing -----------------------
def prepare_params(params, *, in_size, hidden_size, edge_num):
    """Pack / pad / transpose / bf16-block every weight ONCE so the forward
    path does zero weight-side HBM rewrites."""
    Hp = _round_up(hidden_size)
    F = in_size * edge_num
    Inp0 = _round_up(F)
    budget = _vmem_budget()
    prep = {"Hp": Hp, "Inp0": Inp0, "budget": budget, "gru": [], "pred": []}

    for l, layer in enumerate(params["gru"]):
        in_dim_p = Inp0 if l == 0 else Hp
        prep["gru"].append(dict(
            wih=_pack_gate_weights(layer["w_ih"], in_dim_p, Hp),   # (in_p, 3Hp)
            bih=_pack_gate_bias(layer["b_ih"], Hp),                # (1, 3Hp)
            whh=_pack_gate_weights(layer["w_hh"], Hp, Hp),         # (Hp, 3Hp)
            bhh=_pack_gate_bias(layer["b_hh"], Hp),
        ))

    # hidden MLP layers: bf16 weights, pre-blocked into contiguous (nblk,Kp,TN)
    Kp = Hp
    for layer in params["pred"][:-1]:
        N = layer["w"].shape[0]
        Np = _round_up(N, MLP_PAD)
        TN = _pick_tn_mlp(Np, Kp, budget)
        wp = _pad2d(layer["w"].T, Kp, Np).astype(jnp.bfloat16)     # (Kp, Np)
        w_blk = jnp.transpose(wp.reshape(Kp, Np // TN, TN), (1, 0, 2))
        bp = jnp.pad(layer["b"], (0, Np - N)).reshape(1, Np).astype(jnp.float32)
        prep["pred"].append(dict(w=w_blk, b=bp))
        Kp = Np

    last = params["pred"][-1]
    Ep = _round_up(edge_num)
    prep["final"] = dict(
        w=_pad2d(last["w"].T, Kp, Ep),                             # (Kp_last, Ep)
        b=jnp.pad(last["b"], (0, Ep - edge_num)).reshape(1, Ep),
        w_lt=_pad2d(params["w_lt"].T, Hp, Ep),                     # (Hp, Ep)
    )
    return prep


# --------------------------- generic tiled Linear ------------------------------
def _linear_kernel(x_ref, w_ref, b_ref, o_ref):
    o_ref[...] = jnp.dot(x_ref[...], w_ref[...],
                         preferred_element_type=jnp.float32) + b_ref[...]


def matmul_bias_pallas(x, w, b, *, budget):
    """x: (Mp, Kp), w: (Kp, Np) small resident f32 weight, b: (1, Np)."""
    Mp, Kp = x.shape
    _, Np = w.shape
    TM = _pick_tm(Mp)
    return pl.pallas_call(
        _linear_kernel,
        out_shape=jax.ShapeDtypeStruct((Mp, Np), jnp.float32),
        grid_spec=pltpu.PrefetchScalarGridSpec(
            num_scalar_prefetch=0,
            grid=(Mp // TM,),
            in_specs=[
                pl.BlockSpec((TM, Kp), lambda i: (i, 0)),
                pl.BlockSpec((Kp, Np), lambda i: (0, 0)),
                pl.BlockSpec((1, Np), lambda i: (0, 0)),
            ],
            out_specs=pl.BlockSpec((TM, Np), lambda i: (i, 0)),
        ),
        compiler_params=pltpu.CompilerParams(
            dimension_semantics=("parallel",), vmem_limit_bytes=budget),
    )(x, w, b)


# ------------------- MLP layer: bf16 pre-blocked weight streaming -------------
def _mlp_layer_kernel(x_ref, w_ref, b_ref, o_ref):
    acc = jnp.dot(x_ref[...].astype(jnp.bfloat16), w_ref[0],
                  preferred_element_type=jnp.float32)
    o_ref[...] = jnp.maximum(acc + b_ref[...], 0.0)


def mlp_layer_pallas(x, w_blk, b, *, budget):
    """x: (Mp, Kp) f32; w_blk: (nblk, Kp, TN) bf16 contiguous tiles; b: (1, Np)."""
    Mp, Kp = x.shape
    nblk, kw, TN = w_blk.shape
    assert kw == Kp
    TM = _pick_tm(Mp)
    return pl.pallas_call(
        _mlp_layer_kernel,
        out_shape=jax.ShapeDtypeStruct((Mp, nblk * TN), jnp.float32),
        grid_spec=pltpu.PrefetchScalarGridSpec(
            num_scalar_prefetch=0,
            grid=(Mp // TM, nblk),
            in_specs=[
                pl.BlockSpec((TM, Kp), lambda i, j: (i, 0)),
                pl.BlockSpec((1, Kp, TN), lambda i, j: (j, 0, 0)),   # contiguous slab
                pl.BlockSpec((1, TN), lambda i, j: (0, j)),
            ],
            out_specs=pl.BlockSpec((TM, TN), lambda i, j: (i, j)),
        ),
        compiler_params=pltpu.CompilerParams(
            dimension_semantics=("parallel", "parallel"),
            vmem_limit_bytes=budget),
    )(x, w_blk, b)


# ------------------ GRU recurrence: (batch, T) grid, scratch carry ------------
def _gru_gates(gx, gh, h, Hp):
    r = jax.nn.sigmoid(gx[:, 0:Hp] + gh[:, 0:Hp])
    z = jax.nn.sigmoid(gx[:, Hp:2 * Hp] + gh[:, Hp:2 * Hp])
    n = jnp.tanh(gx[:, 2 * Hp:3 * Hp] + r * gh[:, 2 * Hp:3 * Hp])
    return (1.0 - z) * n + z * h


def _gru_step_h_kernel(gx_ref, whh_ref, bhh_ref, out_ref, h_ref, *, Hp):
    @pl.when(pl.program_id(1) == 0)
    def _():
        h_ref[...] = jnp.zeros_like(h_ref)
    h = h_ref[...]
    gh = jnp.dot(h, whh_ref[...], preferred_element_type=jnp.float32) + bhh_ref[...]
    h_new = _gru_gates(gx_ref[0], gh, h, Hp)
    h_ref[...] = h_new
    out_ref[0] = h_new


def _gru_step_next_kernel(gx_ref, whh_ref, bhh_ref, wihn_ref, bihn_ref,
                          out_ref, h_ref, *, Hp):
    # same recurrence step, but also emits the NEXT layer's input projection
    @pl.when(pl.program_id(1) == 0)
    def _():
        h_ref[...] = jnp.zeros_like(h_ref)
    h = h_ref[...]
    gh = jnp.dot(h, whh_ref[...], preferred_element_type=jnp.float32) + bhh_ref[...]
    h_new = _gru_gates(gx_ref[0], gh, h, Hp)
    h_ref[...] = h_new
    out_ref[0] = jnp.dot(h_new, wihn_ref[...],
                         preferred_element_type=jnp.float32) + bihn_ref[...]


def gru_recurrence_pallas(gx, whh_p, bhh_p, wih_next=None, bih_next=None,
                          *, Hp, budget):
    """gx: (T, Bp, 3Hp) precomputed gates -> (T, Bp, Hp) hidden states, or
    (T, Bp, 3Hp) next-layer gates when wih_next/bih_next are given."""
    T, Bp, _ = gx.shape
    TB = Bp // 2 if (Bp >= 16 and Bp % 16 == 0) else Bp     # v7x megacore split
    emit_next = wih_next is not None
    out_cols = (3 * Hp) if emit_next else Hp

    in_specs = [
        pl.BlockSpec((1, TB, 3 * Hp), lambda b, t: (t, b, 0)),
        pl.BlockSpec((Hp, 3 * Hp), lambda b, t: (0, 0)),
        pl.BlockSpec((1, 3 * Hp), lambda b, t: (0, 0)),
    ]
    args = [gx, whh_p, bhh_p]
    if emit_next:
        in_specs += [pl.BlockSpec((Hp, 3 * Hp), lambda b, t: (0, 0)),
                     pl.BlockSpec((1, 3 * Hp), lambda b, t: (0, 0))]
        args += [wih_next, bih_next]
        kernel = functools.partial(_gru_step_next_kernel, Hp=Hp)
    else:
        kernel = functools.partial(_gru_step_h_kernel, Hp=Hp)

    return pl.pallas_call(
        kernel,
        out_shape=jax.ShapeDtypeStruct((T, Bp, out_cols), jnp.float32),
        grid_spec=pltpu.PrefetchScalarGridSpec(
            num_scalar_prefetch=0,
            grid=(Bp // TB, T),
            in_specs=in_specs,
            out_specs=pl.BlockSpec((1, TB, out_cols), lambda b, t: (t, b, 0)),
            scratch_shapes=[pltpu.VMEM((TB, Hp), jnp.float32)],
        ),
        compiler_params=pltpu.CompilerParams(
            dimension_semantics=("parallel", "arbitrary"),
            vmem_limit_bytes=budget),
    )(*args)


# --------- fused: last pred Linear + linear_trans + add + ReLU ----------------
def _final_kernel(a_ref, wa_ref, ba_ref, h_ref, wlt_ref, o_ref):
    pred = jnp.dot(a_ref[...], wa_ref[...], preferred_element_type=jnp.float32)
    pred = pred + ba_ref[...]
    wx = jnp.dot(h_ref[...], wlt_ref[...], preferred_element_type=jnp.float32)
    o_ref[...] = jnp.maximum(pred + wx, 0.0)


def final_fused_pallas(a, wa, ba, h, wlt, *, budget):
    Mp, Ka = a.shape
    _, Ep = wa.shape
    Hp = h.shape[1]
    TM = _pick_tm(Mp)
    TN = Ep if Ep <= 512 else _pick_tn_small(Ep)
    return pl.pallas_call(
        _final_kernel,
        out_shape=jax.ShapeDtypeStruct((Mp, Ep), jnp.float32),
        grid_spec=pltpu.PrefetchScalarGridSpec(
            num_scalar_prefetch=0,
            grid=(Mp // TM, Ep // TN),
            in_specs=[
                pl.BlockSpec((TM, Ka), lambda i, j: (i, 0)),
                pl.BlockSpec((Ka, TN), lambda i, j: (0, j)),
                pl.BlockSpec((1, TN), lambda i, j: (0, j)),
                pl.BlockSpec((TM, Hp), lambda i, j: (i, 0)),
                pl.BlockSpec((Hp, TN), lambda i, j: (0, j)),
            ],
            out_specs=pl.BlockSpec((TM, TN), lambda i, j: (i, j)),
        ),
        compiler_params=pltpu.CompilerParams(
            dimension_semantics=("parallel", "parallel"),
            vmem_limit_bytes=budget),
    )(a, wa, ba, h, wlt)


# ------------------------------- parameters ----------------------------------
def init_params(key, in_size, hidden_size, num_layers, edge_num):
    params = {"gru": [], "pred": []}
    F = in_size * edge_num
    k = 1.0 / np.sqrt(hidden_size)
    for layer in range(num_layers):
        in_dim = F if layer == 0 else hidden_size
        key, k1, k2, k3, k4 = jax.random.split(key, 5)
        params["gru"].append(dict(
            w_ih=jax.random.uniform(k1, (3 * hidden_size, in_dim), jnp.float32, -k, k),
            w_hh=jax.random.uniform(k2, (3 * hidden_size, hidden_size), jnp.float32, -k, k),
            b_ih=jax.random.uniform(k3, (3 * hidden_size,), jnp.float32, -k, k),
            b_hh=jax.random.uniform(k4, (3 * hidden_size,), jnp.float32, -k, k),
        ))
    dims = [hidden_size] + PRED_HIDDEN_DIMS + [edge_num]
    for i in range(len(dims) - 1):
        kk = 1.0 / np.sqrt(dims[i])
        key, k1, k2 = jax.random.split(key, 3)
        params["pred"].append(dict(
            w=jax.random.uniform(k1, (dims[i + 1], dims[i]), jnp.float32, -kk, kk),
            b=jax.random.uniform(k2, (dims[i + 1],), jnp.float32, -kk, kk),
        ))
    key, k1 = jax.random.split(key)
    klt = 1.0 / np.sqrt(hidden_size)
    params["w_lt"] = jax.random.uniform(k1, (edge_num, hidden_size), jnp.float32, -klt, klt)
    return params


# -------------------------------- forward ------------------------------------
def forward_pallas(prep, seq, *, in_size, hidden_size, window_width, edge_num, horizon):
    F = in_size * edge_num
    Hp, Inp0, budget = prep["Hp"], prep["Inp0"], prep["budget"]

    seq = seq.reshape(-1, window_width, F).astype(jnp.float32)
    B = seq.shape[0]
    T = window_width + horizon - 1
    pad = jnp.zeros((B, horizon - 1, F), jnp.float32)
    pad_seq = jnp.concatenate([seq, pad], axis=1)           # (B, T, F)

    Bp = _round_up(max(B, 8), 8)                            # full (8,128) tiles
    x = jnp.transpose(pad_seq, (1, 0, 2))                   # (T, B, F)
    x = jnp.pad(x, ((0, 0), (0, Bp - B), (0, 0)))           # (T, Bp, F)

    # ---- layer-0 input projection: one big MXU GEMM, hoisted out of recurrence
    flat = jnp.pad(x.reshape(T * Bp, F), ((0, 0), (0, Inp0 - F)))
    g0 = prep["gru"][0]
    gx = matmul_bias_pallas(flat, g0["wih"], g0["bih"], budget=budget)
    gx = gx.reshape(T, Bp, 3 * Hp)

    # ---- recurrence: layers 0..L-2 also emit the next layer's gx in-kernel
    L = len(prep["gru"])
    act = None
    for l in range(L):
        lyr = prep["gru"][l]
        if l + 1 < L:
            nxt = prep["gru"][l + 1]
            gx = gru_recurrence_pallas(gx, lyr["whh"], lyr["bhh"],
                                       nxt["wih"], nxt["bih"],
                                       Hp=Hp, budget=budget)        # (T,Bp,3Hp)
        else:
            act = gru_recurrence_pallas(gx, lyr["whh"], lyr["bhh"],
                                        Hp=Hp, budget=budget)        # (T,Bp,Hp)

    # last `horizon` timesteps, real batch rows, kept lane-dense (Hp columns)
    out = act[T - horizon:T, :B, :]                          # (horizon, B, Hp)
    out_bt = jnp.transpose(out, (1, 0, 2)).reshape(B * horizon, Hp)
    M = B * horizon
    Mp = _round_up(M, 8)
    mlp_in = jnp.pad(out_bt, ((0, Mp - M), (0, 0)))          # (Mp, Hp)

    # ---- prediction MLP: bf16 weight streaming, padded activations ----
    h = mlp_in
    for lyr in prep["pred"]:
        h = mlp_layer_pallas(h, lyr["w"], lyr["b"], budget=budget)

    # ---- fused final Linear + linear_trans + ReLU ----
    fin = prep["final"]
    res = final_fused_pallas(h, fin["w"], fin["b"], mlp_in, fin["w_lt"],
                             budget=budget)                  # (Mp, Ep)
    return res[:M, :edge_num].reshape(B, horizon, edge_num)


# --------------------------- pure-JAX reference -------------------------------
def _ref_gru_layer(x_btf, w_ih, w_hh, b_ih, b_hh):
    B, T, _ = x_btf.shape
    H = w_hh.shape[1]
    h = jnp.zeros((B, H), jnp.float32)
    outs = []
    for t in range(T):
        xt = x_btf[:, t, :]
        gx = jnp.dot(xt, w_ih.T, precision="highest") + b_ih
        gh = jnp.dot(h, w_hh.T, precision="highest") + b_hh
        r = jax.nn.sigmoid(gx[:, :H] + gh[:, :H])
        z = jax.nn.sigmoid(gx[:, H:2 * H] + gh[:, H:2 * H])
        n = jnp.tanh(gx[:, 2 * H:] + r * gh[:, 2 * H:])
        h = (1.0 - z) * n + z * h
        outs.append(h)
    return jnp.stack(outs, axis=1)


def forward_ref(params, seq, *, in_size, hidden_size, window_width, edge_num, horizon):
    F = in_size * edge_num
    seq = seq.reshape(-1, window_width, F).astype(jnp.float32)
    B = seq.shape[0]
    pad = jnp.zeros((B, horizon - 1, F), jnp.float32)
    x = jnp.concatenate([seq, pad], axis=1)
    for layer in params["gru"]:
        x = _ref_gru_layer(x, layer["w_ih"], layer["w_hh"], layer["b_ih"], layer["b_hh"])
    T = x.shape[1]
    out = x[:, T - horizon:T, :]
    out2d = out.reshape(B * horizon, hidden_size)
    h = out2d
    for layer in params["pred"][:-1]:
        h = jax.nn.relu(jnp.dot(h, layer["w"].T, precision="highest") + layer["b"])
    last = params["pred"][-1]
    pred_out = jnp.dot(h, last["w"].T, precision="highest") + last["b"]
    wx = jnp.dot(out2d, params["w_lt"].T, precision="highest")
    return jax.nn.relu(pred_out + wx).reshape(B, horizon, edge_num)


# ---------------------------------- main --------------------------------------
if __name__ == "__main__":
    in_size = 4
    edge_num = 8
    hidden_size = 32
    num_layers = 2
    window_width = 6
    batch_size = 2
    horizon = 4

    key = jax.random.PRNGKey(0)
    key, pkey, xkey = jax.random.split(key, 3)
    params = init_params(pkey, in_size, hidden_size, num_layers, edge_num)
    seq = jax.random.normal(xkey, (batch_size, window_width, edge_num, in_size), jnp.float32)

    kwargs = dict(in_size=in_size, hidden_size=hidden_size, window_width=window_width,
                  edge_num=edge_num, horizon=horizon)

    # One-time weight preprocessing (hoisted out of the forward path).
    prep = prepare_params(params, in_size=in_size, hidden_size=hidden_size,
                          edge_num=edge_num)
    prep = jax.block_until_ready(prep)

    res = forward_pallas(prep, seq, **kwargs)
    res = jax.block_until_ready(res)

    ref = jax.block_until_ready(forward_ref(params, seq, **kwargs))

    assert res.shape == (batch_size, horizon, edge_num), res.shape
    assert np.allclose(np.asarray(res), np.asarray(ref), rtol=1e-2, atol=1e-2), (
        "mismatch vs pure-JAX reference")
    print("KERNEL_OK")
</pallas_src>

<mosaic_0001>
module attributes {stable_mosaic.version = 11 : i64} {
  func.func @_linear_kernel(%arg0: i32, %arg1: memref<72x128xf32, #tpu.memory_space<vmem>>, %arg2: memref<128x384xf32, #tpu.memory_space<vmem>>, %arg3: memref<1x384xf32, #tpu.memory_space<vmem>>, %arg4: memref<72x384xf32, #tpu.memory_space<vmem>>) attributes {dimension_semantics = [#tpu.dimension_semantics<parallel>], iteration_bounds = array<i64: 1>, scalar_prefetch = 0 : i64, scratch_operands = 0 : i64, tpu.core_type = #tpu.core_type<tc>, window_params = [{transform_indices = @transform_0, window_bounds = array<i64: 72, 128>}, {pipeline_mode = #tpu.pipeline_mode<synchronous>, transform_indices = @transform_1, window_bounds = array<i64: 128, 384>}, {pipeline_mode = #tpu.pipeline_mode<synchronous>, transform_indices = @transform_2, window_bounds = array<i64: 1, 384>}, {transform_indices = @transform_3, window_bounds = array<i64: 72, 384>}]} {
    %c0 = arith.constant 0 : index
    %c0_0 = arith.constant 0 : index
    %0 = vector.load %arg1[%c0, %c0_0] : memref<72x128xf32, #tpu.memory_space<vmem>>, vector<72x128xf32>
    %c0_1 = arith.constant 0 : index
    %c0_2 = arith.constant 0 : index
    %1 = vector.load %arg2[%c0_1, %c0_2] : memref<128x384xf32, #tpu.memory_space<vmem>>, vector<128x384xf32>
    %cst = arith.constant dense<0.000000e+00> : vector<72x384xf32>
    %2 = tpu.matmul %0, %1, %cst {dimension_numbers = #tpu.dot_dimension_numbers<[1], [0], [0], [1], [0, 0, 1, 1], [], []>} : vector<72x128xf32>, vector<128x384xf32>, vector<72x384xf32> -> vector<72x384xf32>
    %c0_3 = arith.constant 0 : index
    %c0_4 = arith.constant 0 : index
    %3 = vector.load %arg3[%c0_3, %c0_4] : memref<1x384xf32, #tpu.memory_space<vmem>>, vector<1x384xf32>
    %4 = vector.broadcast %3 : vector<1x384xf32> to vector<72x384xf32>
    %5 = arith.addf %2, %4 : vector<72x384xf32>
    %c0_5 = arith.constant 0 : index
    %c0_6 = arith.constant 0 : index
    %6 = vector.load %arg4[%c0_5, %c0_6] : memref<72x384xf32, #tpu.memory_space<vmem>>, vector<72x384xf32>
    tpu.vector_store %arg4[%c0_5, %c0_6], %5 {strides = array<i32>} : memref<72x384xf32, #tpu.memory_space<vmem>>, vector<72x384xf32>,
    return
  }
  func.func @transform_0(%arg0: i32) -> (i32, i32) {
    %c0_i32 = arith.constant 0 : i32
    %c0_i32_0 = arith.constant 0 : i32
    return %arg0, %c0_i32 : i32, i32
  }
  func.func @transform_1(%arg0: i32) -> (i32, i32) {
    %c0_i32 = arith.constant 0 : i32
    %c0_i32_0 = arith.constant 0 : i32
    %c0_i32_1 = arith.constant 0 : i32
    return %c0_i32, %c0_i32_0 : i32, i32
  }
  func.func @transform_2(%arg0: i32) -> (i32, i32) {
    %c0_i32 = arith.constant 0 : i32
    %c0_i32_0 = arith.constant 0 : i32
    %c0_i32_1 = arith.constant 0 : i32
    return %c0_i32, %c0_i32_0 : i32, i32
  }
  func.func @transform_3(%arg0: i32) -> (i32, i32) {
    %c0_i32 = arith.constant 0 : i32
    %c0_i32_0 = arith.constant 0 : i32
    return %arg0, %c0_i32 : i32, i32
  }
}

</mosaic_0001>

<bundles_post_ra>
// kernel: tpu_custom_call.1
= control target key start
LH: loop header
LB: loop body
LE: loop exit
PB: predicated region body
PF: predicated region fallthrough
CT: control target
= control target key end

     0   :  { %8 = vsyncpa [#allocation3], 0  ;;  %s673_s0 = inlined_call_operand.hbm [shape: f32[72,128], index: 0, kind: input, shape index: {}]   ;;  %s674_s1 = inlined_call_operand.hbm [shape: f32[128,384], index: 1, kind: input, shape index: {}]   ;;  %s675_s2 = inlined_call_operand.vmem [shape: f32[1,384], index: 2, kind: input, shape index: {}]   ;;  %s676_s3 = inlined_call_operand.hbm [shape: f32[72,384], index: 3, kind: output, shape index: {}]  }
   0x1   :  { %9 = vsyncpa [#allocation6], 0 }
   0x2   :  { %10 = vsyncpa [#allocation4], 0  ;;  %s550_s12 = smov [#allocation2]  }
   0x3   :  { %s16_s13 = sshll.u32 %s550_s12, 4  ;;  %s17_s13 = int_to_ptr.vmem [resolvable:$true] %s16_s13 }
   0x4   :  { %s492_s14 = scalar_lea.vmem %s17_s13, 1152  ;;  %p497_p1 = scmp.lt.s32.totalorder %s17_s13, %s17_s13 }
   0x5   :  { %p493_p0 = scmp.ne.s32.totalorder %s17_s13, %s492_s14  ;;  %p498_p2 = scmp.lt.s32.totalorder %s492_s14, %s492_s14 }
   0x7   :  { %p499_p3 = por %p498_p2, %p497_p1 }
   0x9   :  { %p500_p4 = pnand %p499_p3, %p493_p0 }
   0xb   :  { %503 = shalt.err (!%p500_p4)
}
   0xc   :  { %s551_s15 = smov 128   ;;  %s552_s16 = smov 8  }
   0xd   :  { %22 = dma.hbm_to_vmem [thread:$0]  %s673_s0, 1152, %s17_s13, [#allocation3], %s551_s15, %s551_s15, %s552_s16  }
   0xe   :  { %s553_s19 = smov [#allocation5]  }
   0xf   :  { %s28_s20 = sshll.u32 %s553_s19, 4  ;;  %s29_s20 = int_to_ptr.vmem [resolvable:$true] %s28_s20 }
  0x10   :  { %s512_s21 = scalar_lea.vmem %s29_s20, 6144  ;;  %p517_p6 = scmp.lt.s32.totalorder %s29_s20, %s29_s20 }
  0x11   :  { %p513_p5 = scmp.ne.s32.totalorder %s29_s20, %s512_s21  ;;  %p518_p7 = scmp.lt.s32.totalorder %s512_s21, %s512_s21 }
  0x13   :  { %p519_p8 = por %p518_p7, %p517_p6 }
  0x15   :  { %p520_p9 = pnand %p519_p8, %p513_p5 }
  0x17   :  { %523 = shalt.err (!%p520_p9)
}
  0x18   :  { %s554_s22 = smov 384   ;;  %s555_s23 = smov 24  }
  0x19   :  { %34 = dma.hbm_to_vmem [thread:$0]  %s674_s1, 6144, %s29_s20, [#allocation6], %s554_s22, %s554_s22, %s555_s23  }
  0x1a   :  { %544 = dma.done.wait [#allocation3], 1152  }
  0x1b   :  { %545 = vsyncadd [#allocation3], 4294966144 }
  0x1c   :  { %546 = dma.done.wait [#allocation6], 6144  }
  0x1d   :  { %547 = vsyncadd [#allocation6], 4294961152  ;;  %v556_v0 = vmov 0.0   ;;  %vm557_vm0 = vmmov 0   ;;  %v98_v1 = vld [vmem:[#allocation5 + $0x170] sm:$0xff]  ;;  %v97_v2 = vld [vmem:[#allocation5 + $0x168] sm:$0xff]  ;;  %v102_v58 = vlaneseq }
  0x1e   :  { %416 = vmatprep.subr.mxu1 %v556_v0  ;;  %181 = vmatprep.mubr.f32.mxu0 %v556_v0  ;;  %v99_v3 = vld [vmem:[#allocation5 + $0x178] sm:$0xff]  ;;  %v94_v5 = vld [vmem:[#allocation5 + $0x150] sm:$0xff]  ;;  %v96_v6 = vld [vmem:[#allocation5 + $0x160] sm:$0xff] }
  0x1f   :  { %448 = vmatprep.mubr.msk.f32.mxu1 %vm557_vm0, %v556_v0  ;;  %117 = vmatprep.subr.mxu0 %v98_v1  ;;  %v95_v4 = vld [vmem:[#allocation5 + $0x158] sm:$0xff]  ;;  %v92_v7 = vld [vmem:[#allocation5 + $0x140] sm:$0xff]  ;;  %v93_v8 = vld [vmem:[#allocation5 + $0x148] sm:$0xff]  ;;  %v103_v59 = vshrl.u32 %v102_v58, 7 }
  0x20   :  { %417 = vmatpush3.msra.mxu1 %v99_v3  ;;  %118 = vmatpush1.msra.mxu0 %v97_v2  ;;  %v91_v9 = vld [vmem:[#allocation5 + $0x138] sm:$0xff]  ;;  %v89_v10 = vld [vmem:[#allocation5 + $0x128] sm:$0xff]  ;;  %v90_v11 = vld [vmem:[#allocation5 + $0x130] sm:$0xff] }
  0x21   :  { %418 = vmatprep.subr.mxu1 %v556_v0  ;;  %119 = vmatprep.subr.mxu0 %v95_v4  ;;  %v88_v12 = vld [vmem:[#allocation5 + $0x120] sm:$0xff]  ;;  %v86_v13 = vld [vmem:[#allocation5 + $0x110] sm:$0xff]  ;;  %v87_v14 = vld [vmem:[#allocation5 + $0x118] sm:$0xff]  ;;  %v112_v60 = vsub.s32 2, %v103_v59  ;;  %v104_v61 = vsub.s32 0, %v103_v59  ;;  %v108_v63 = vsub.s32 1, %v103_v59 }
  0x22   :  { %419 = vmatpush3.msra.mxu1 %v96_v6  ;;  %120 = vmatpush1.msra.mxu0 %v94_v5  ;;  %v85_v15 = vld [vmem:[#allocation5 + $0x108] sm:$0xff]  ;;  %v83_v16 = vld [vmem:[#allocation5 + $0xf8] sm:$0xff]  ;;  %v84_v17 = vld [vmem:[#allocation5 + $0x100] sm:$0xff] }
  0x23   :  { %420 = vmatprep.subr.mxu1 %v556_v0  ;;  %121 = vmatprep.subr.mxu0 %v92_v7  ;;  %v82_v18 = vld [vmem:[#allocation5 + $0xf0] sm:$0xff]  ;;  %v80_v19 = vld [vmem:[#allocation5 + $0xe0] sm:$0xff]  ;;  %v81_v20 = vld [vmem:[#allocation5 + $0xe8] sm:$0xff] }
  0x24   :  { %421 = vmatpush3.msra.mxu1 %v93_v8  ;;  %122 = vmatpush1.msra.mxu0 %v91_v9  ;;  %v79_v21 = vld [vmem:[#allocation5 + $0xd8] sm:$0xff]  ;;  %v77_v22 = vld [vmem:[#allocation5 + $0xc8] sm:$0xff]  ;;  %v78_v23 = vld [vmem:[#allocation5 + $0xd0] sm:$0xff] }
  0x25   :  { %422 = vmatprep.subr.mxu1 %v556_v0  ;;  %123 = vmatprep.subr.mxu0 %v89_v10  ;;  %v76_v24 = vld [vmem:[#allocation5 + $0xc0] sm:$0xff]  ;;  %v74_v25 = vld [vmem:[#allocation5 + $0xb0] sm:$0xff]  ;;  %v75_v26 = vld [vmem:[#allocation5 + $0xb8] sm:$0xff] }
  0x26   :  { %423 = vmatpush3.msra.mxu1 %v90_v11  ;;  %124 = vmatpush1.msra.mxu0 %v88_v12  ;;  %v73_v27 = vld [vmem:[#allocation5 + $0xa8] sm:$0xff]  ;;  %v71_v28 = vld [vmem:[#allocation5 + $0x98] sm:$0xff]  ;;  %v72_v29 = vld [vmem:[#allocation5 + $0xa0] sm:$0xff] }
  0x27   :  { %424 = vmatprep.subr.mxu1 %v556_v0  ;;  %125 = vmatprep.subr.mxu0 %v86_v13  ;;  %v70_v30 = vld [vmem:[#allocation5 + $0x90] sm:$0xff]  ;;  %v68_v31 = vld [vmem:[#allocation5 + $0x80] sm:$0xff]  ;;  %v69_v32 = vld [vmem:[#allocation5 + $0x88] sm:$0xff] }
  0x28   :  { %425 = vmatpush3.msra.mxu1 %v87_v14  ;;  %126 = vmatpush1.msra.mxu0 %v85_v15  ;;  %v67_v33 = vld [vmem:[#allocation5 + $0x78] sm:$0xff]  ;;  %v65_v34 = vld [vmem:[#allocation5 + $0x68] sm:$0xff]  ;;  %v66_v35 = vld [vmem:[#allocation5 + $0x70] sm:$0xff] }
  0x29   :  { %426 = vmatprep.subr.mxu1 %v556_v0  ;;  %127 = vmatprep.subr.mxu0 %v83_v16  ;;  %v64_v36 = vld [vmem:[#allocation5 + $0x60] sm:$0xff]  ;;  %v62_v37 = vld [vmem:[#allocation5 + $0x50] sm:$0xff]  ;;  %v63_v38 = vld [vmem:[#allocation5 + $0x58] sm:$0xff] }
  0x2a   :  { %427 = vmatpush3.msra.mxu1 %v84_v17  ;;  %128 = vmatpush1.msra.mxu0 %v82_v18  ;;  %v61_v39 = vld [vmem:[#allocation5 + $0x48] sm:$0xff]  ;;  %v59_v40 = vld [vmem:[#allocation5 + $0x38] sm:$0xff]  ;;  %v60_v41 = vld [vmem:[#allocation5 + $0x40] sm:$0xff] }
  0x2b   :  { %428 = vmatprep.subr.mxu1 %v556_v0  ;;  %129 = vmatprep.subr.mxu0 %v80_v19  ;;  %v58_v42 = vld [vmem:[#allocation5 + $0x30] sm:$0xff]  ;;  %v56_v43 = vld [vmem:[#allocation5 + $0x20] sm:$0xff]  ;;  %v57_v44 = vld [vmem:[#allocation5 + $0x28] sm:$0xff] }
  0x2c   :  { %429 = vmatpush3.msra.mxu1 %v81_v20  ;;  %130 = vmatpush1.msra.mxu0 %v79_v21  ;;  %v55_v45 = vld [vmem:[#allocation5 + $0x18] sm:$0xff]  ;;  %v53_v46 = vld [vmem:[#allocation5 + $0x8] sm:$0xff]  ;;  %v54_v47 = vld [vmem:[#allocation5 + $0x10] sm:$0xff] }
  0x2d   :  { %430 = vmatprep.subr.mxu1 %v556_v0  ;;  %131 = vmatprep.subr.mxu0 %v77_v22  ;;  %v52_v48 = vld [vmem:[#allocation5] sm:$0xff]  ;;  %v43_v49 = vld [vmem:[#allocation2] sm:$0xff]  ;;  %v45_v51 = vld [vmem:[#allocation2 + $0x10] sm:$0xff] }
  0x2e   :  { %431 = vmatpush3.msra.mxu1 %v78_v23  ;;  %132 = vmatpush1.msra.mxu0 %v76_v24  ;;  %v44_v50 = vld [vmem:[#allocation2 + $0x8] sm:$0xff]  ;;  %v46_v52 = vld [vmem:[#allocation2 + $0x18] sm:$0xff]  ;;  %v47_v53 = vld [vmem:[#allocation2 + $0x20] sm:$0xff] }
  0x2f   :  { %432 = vmatprep.subr.mxu1 %v556_v0  ;;  %133 = vmatprep.subr.mxu0 %v74_v25  ;;  %v48_v54 = vld [vmem:[#allocation2 + $0x28] sm:$0xff]  ;;  %v49_v55 = vld [vmem:[#allocation2 + $0x30] sm:$0xff]  ;;  %v50_v56 = vld [vmem:[#allocation2 + $0x38] sm:$0xff] }
  0x30   :  { %433 = vmatpush3.msra.mxu1 %v75_v26  ;;  %134 = vmatpush1.msra.mxu0 %v73_v27  ;;  %v51_v57 = vld [vmem:[#allocation2 + $0x40] sm:$0xff] }
  0x31   :  { %434 = vmatprep.subr.mxu1 %v556_v0  ;;  %135 = vmatprep.subr.mxu0 %v71_v28  ;;  %v100_v62 = vld [vmem:[%s675_s2] sm:$0x7]  ;;  %s558_s2 = smov [#allocation7]  }
  0x32   :  { %435 = vmatpush3.msra.mxu1 %v72_v29  ;;  %136 = vmatpush1.msra.mxu0 %v70_v30  ;;  %v634_v1 = vrot.slane %v100_v62, %v112_v60  ;;  %v636_v2 = vrot.slane %v100_v62, %v104_v61  ;;  %v638_v4 = vrot.slane %v100_v62, %v108_v63  ;;  %s378_s26 = sshll.u32 %s558_s2, 4  ;;  %s379_s26 = int_to_ptr.vmem [resolvable:$true] %s378_s26 }
  0x33   :  { %436 = vmatprep.subr.mxu1 %v556_v0  ;;  %137 = vmatprep.subr.mxu0 %v68_v31  ;;  %s524_s27 = scalar_lea.vmem %s379_s26, 3456  ;;  %p529_p11 = scmp.lt.s32.totalorder %s379_s26, %s379_s26 }
  0x34   :  { %437 = vmatpush3.msra.mxu1 %v69_v32  ;;  %138 = vmatpush1.msra.mxu0 %v67_v33  ;;  %p525_p10 = scmp.ne.s32.totalorder %s379_s26, %s524_s27  ;;  %p530_p12 = scmp.lt.s32.totalorder %s524_s27, %s524_s27 }
  0x35   :  { %438 = vmatprep.subr.mxu1 %v556_v0  ;;  %139 = vmatprep.subr.mxu0 %v65_v34 }
  0x36   :  { %439 = vmatpush3.msra.mxu1 %v66_v35  ;;  %140 = vmatpush1.msra.mxu0 %v64_v36  ;;  %p531_p13 = por %p530_p12, %p529_p11 }
  0x37   :  { %440 = vmatprep.subr.mxu1 %v556_v0  ;;  %141 = vmatprep.subr.mxu0 %v62_v37 }
  0x38   :  { %441 = vmatpush3.msra.mxu1 %v63_v38  ;;  %142 = vmatpush1.msra.mxu0 %v61_v39  ;;  %p532_p0 = pnand %p531_p13, %p525_p10 }
  0x39   :  { %442 = vmatprep.subr.mxu1 %v556_v0  ;;  %143 = vmatprep.subr.mxu0 %v59_v40 }
  0x3a   :  { %443 = vmatpush3.msra.mxu1 %v60_v41  ;;  %144 = vmatpush1.msra.mxu0 %v58_v42 }
  0x3b   :  { %444 = vmatprep.subr.mxu1 %v556_v0  ;;  %145 = vmatprep.subr.mxu0 %v56_v43 }
  0x3c   :  { %445 = vmatpush3.msra.mxu1 %v57_v44  ;;  %146 = vmatpush1.msra.mxu0 %v55_v45 }
  0x3d   :  { %446 = vmatprep.subr.mxu1 %v556_v0  ;;  %147 = vmatprep.subr.mxu0 %v53_v46 }
  0x3e   :  { %447 = vmatpush3.msra.mxu1 %v54_v47  ;;  %148 = vmatpush1.msra.mxu0 %v52_v48 }
  0x3f   :  { %449 = vmatmul.mubr.f32.vlgmr.msra.gmra.mxu1 %v43_v49  ;;  %182 = vmatmul.mubr.f32.vlgmr.msra.gmra.mxu0 %v43_v49 }
  0x40   :  { %451 = vmatprep.mubr.msk.f32.mxu1 %vm557_vm0, %v556_v0  ;;  %187 = vmatprep.mubr.f32.mxu0 %v556_v0 }
  0x43   :  { %452 = vmatmul.mubr.f32.gmra.mxu1 %v44_v50  ;;  %188 = vmatmul.mubr.f32.gmra.mxu0 %v44_v50 }
  0x44   :  { %454 = vmatprep.mubr.msk.f32.mxu1 %vm557_vm0, %v556_v0  ;;  %193 = vmatprep.mubr.f32.mxu0 %v556_v0 }
  0x47   :  { %455 = vmatmul.mubr.f32.gmra.mxu1 %v45_v51  ;;  %194 = vmatmul.mubr.f32.gmra.mxu0 %v45_v51 }
  0x48   :  { %457 = vmatprep.mubr.msk.f32.mxu1 %vm557_vm0, %v556_v0  ;;  %199 = vmatprep.mubr.f32.mxu0 %v556_v0 }
  0x4b   :  { %458 = vmatmul.mubr.f32.gmra.mxu1 %v46_v52  ;;  %200 = vmatmul.mubr.f32.gmra.mxu0 %v46_v52 }
  0x4c   :  { %460 = vmatprep.mubr.msk.f32.mxu1 %vm557_vm0, %v556_v0  ;;  %205 = vmatprep.mubr.f32.mxu0 %v556_v0 }
  0x4f   :  { %461 = vmatmul.mubr.f32.gmra.mxu1 %v47_v53  ;;  %206 = vmatmul.mubr.f32.gmra.mxu0 %v47_v53 }
  0x50   :  { %463 = vmatprep.mubr.msk.f32.mxu1 %vm557_vm0, %v556_v0  ;;  %211 = vmatprep.mubr.f32.mxu0 %v556_v0 }
  0x53   :  { %464 = vmatmul.mubr.f32.gmra.mxu1 %v48_v54  ;;  %212 = vmatmul.mubr.f32.gmra.mxu0 %v48_v54 }
  0x54   :  { %466 = vmatprep.mubr.msk.f32.mxu1 %vm557_vm0, %v556_v0  ;;  %217 = vmatprep.mubr.f32.mxu0 %v556_v0 }
  0x57   :  { %467 = vmatmul.mubr.f32.gmra.mxu1 %v49_v55  ;;  %218 = vmatmul.mubr.f32.gmra.mxu0 %v49_v55 }
  0x58   :  { %469 = vmatprep.mubr.msk.f32.mxu1 %vm557_vm0, %v556_v0  ;;  %223 = vmatprep.mubr.f32.mxu0 %v556_v0 }
  0x5b   :  { %470 = vmatmul.mubr.f32.gmra.mxu1 %v50_v56  ;;  %224 = vmatmul.mubr.f32.gmra.mxu0 %v50_v56 }
  0x5c   :  { %472 = vmatprep.mubr.msk.f32.mxu1 %vm557_vm0, %v556_v0  ;;  %229 = vmatprep.mubr.f32.mxu0 %v556_v0 }
  0x5f   :  { %473 = vmatmul.mubr.f32.gmra.mxu1 %v51_v57  ;;  %230 = vmatmul.mubr.f32.gmra.mxu0 %v51_v57 }
  0xff   :  { %v302_v3 = vpop.f32.mrf.mxu1  ;;  %v183_v5 = vpop.f32.mrf.mxu0 }
 0x100   :  { %v303_v0 = vadd.f32 %v302_v3, %v634_v1  ;;  %v184_v6 = vadd.f32 %v183_v5, %v636_v2 }
 0x101   :  { %v450_v7 = vpop.f32.mrf.mxu1  ;;  %v185_v8 = vpop.f32.mrf.mxu0 }
 0x102   :  { %348 = vst [vmem:[#allocation7 + $0x10] sm:$0xff] %v303_v0  ;;  %346 = vst [vmem:[#allocation7] sm:$0xff] %v184_v6  ;;  %v186_v9 = vadd.f32 %v185_v8, %v638_v4 }
 0x103   :  { %v307_v10 = vpop.f32.mrf.mxu1  ;;  %v189_v11 = vpop.f32.mrf.mxu0 }
 0x104   :  { %v308_v12 = vadd.f32 %v307_v10, %v634_v1  ;;  %347 = vst [vmem:[#allocation7 + $0x8] sm:$0xff] %v186_v9  ;;  %v190_v13 = vadd.f32 %v189_v11, %v636_v2 }
 0x105   :  { %v453_v14 = vpop.f32.mrf.mxu1  ;;  %v191_v15 = vpop.f32.mrf.mxu0 }
 0x106   :  { %351 = vst [vmem:[#allocation7 + $0x28] sm:$0xff] %v308_v12  ;;  %349 = vst [vmem:[#allocation7 + $0x18] sm:$0xff] %v190_v13  ;;  %v192_v16 = vadd.f32 %v191_v15, %v638_v4 }
 0x107   :  { %v312_v17 = vpop.f32.mrf.mxu1  ;;  %v195_v18 = vpop.f32.mrf.mxu0 }
 0x108   :  { %v313_v19 = vadd.f32 %v312_v17, %v634_v1  ;;  %350 = vst [vmem:[#allocation7 + $0x20] sm:$0xff] %v192_v16  ;;  %v196_v20 = vadd.f32 %v195_v18, %v636_v2 }
 0x109   :  { %v456_v21 = vpop.f32.mrf.mxu1  ;;  %v197_v22 = vpop.f32.mrf.mxu0 }
 0x10a   :  { %354 = vst [vmem:[#allocation7 + $0x40] sm:$0xff] %v313_v19  ;;  %352 = vst [vmem:[#allocation7 + $0x30] sm:$0xff] %v196_v20  ;;  %v198_v23 = vadd.f32 %v197_v22, %v638_v4 }
 0x10b   :  { %v317_v24 = vpop.f32.mrf.mxu1  ;;  %v201_v25 = vpop.f32.mrf.mxu0 }
 0x10c   :  { %v318_v26 = vadd.f32 %v317_v24, %v634_v1  ;;  %353 = vst [vmem:[#allocation7 + $0x38] sm:$0xff] %v198_v23  ;;  %v202_v27 = vadd.f32 %v201_v25, %v636_v2 }
 0x10d   :  { %v459_v28 = vpop.f32.mrf.mxu1  ;;  %v203_v29 = vpop.f32.mrf.mxu0 }
 0x10e   :  { %357 = vst [vmem:[#allocation7 + $0x58] sm:$0xff] %v318_v26  ;;  %355 = vst [vmem:[#allocation7 + $0x48] sm:$0xff] %v202_v27  ;;  %v204_v30 = vadd.f32 %v203_v29, %v638_v4 }
 0x10f   :  { %v322_v31 = vpop.f32.mrf.mxu1  ;;  %v207_v32 = vpop.f32.mrf.mxu0 }
 0x110   :  { %v323_v33 = vadd.f32 %v322_v31, %v634_v1  ;;  %356 = vst [vmem:[#allocation7 + $0x50] sm:$0xff] %v204_v30  ;;  %v208_v34 = vadd.f32 %v207_v32, %v636_v2 }
 0x111   :  { %v462_v35 = vpop.f32.mrf.mxu1  ;;  %v209_v36 = vpop.f32.mrf.mxu0 }
 0x112   :  { %360 = vst [vmem:[#allocation7 + $0x70] sm:$0xff] %v323_v33  ;;  %358 = vst [vmem:[#allocation7 + $0x60] sm:$0xff] %v208_v34  ;;  %v210_v37 = vadd.f32 %v209_v36, %v638_v4 }
 0x113   :  { %v327_v38 = vpop.f32.mrf.mxu1  ;;  %v213_v39 = vpop.f32.mrf.mxu0 }
 0x114   :  { %v328_v40 = vadd.f32 %v327_v38, %v634_v1  ;;  %359 = vst [vmem:[#allocation7 + $0x68] sm:$0xff] %v210_v37  ;;  %v214_v41 = vadd.f32 %v213_v39, %v636_v2 }
 0x115   :  { %v465_v42 = vpop.f32.mrf.mxu1  ;;  %v215_v43 = vpop.f32.mrf.mxu0 }
 0x116   :  { %363 = vst [vmem:[#allocation7 + $0x88] sm:$0xff] %v328_v40  ;;  %361 = vst [vmem:[#allocation7 + $0x78] sm:$0xff] %v214_v41  ;;  %v216_v44 = vadd.f32 %v215_v43, %v638_v4 }
 0x117   :  { %v332_v45 = vpop.f32.mrf.mxu1  ;;  %v219_v46 = vpop.f32.mrf.mxu0 }
 0x118   :  { %v333_v47 = vadd.f32 %v332_v45, %v634_v1  ;;  %362 = vst [vmem:[#allocation7 + $0x80] sm:$0xff] %v216_v44  ;;  %v220_v48 = vadd.f32 %v219_v46, %v636_v2 }
 0x119   :  { %v468_v49 = vpop.f32.mrf.mxu1  ;;  %v221_v50 = vpop.f32.mrf.mxu0 }
 0x11a   :  { %366 = vst [vmem:[#allocation7 + $0xa0] sm:$0xff] %v333_v47  ;;  %364 = vst [vmem:[#allocation7 + $0x90] sm:$0xff] %v220_v48  ;;  %v222_v51 = vadd.f32 %v221_v50, %v638_v4 }
 0x11b   :  { %v337_v52 = vpop.f32.mrf.mxu1  ;;  %v225_v53 = vpop.f32.mrf.mxu0 }
 0x11c   :  { %v338_v54 = vadd.f32 %v337_v52, %v634_v1  ;;  %365 = vst [vmem:[#allocation7 + $0x98] sm:$0xff] %v222_v51  ;;  %v226_v55 = vadd.f32 %v225_v53, %v636_v2 }
 0x11d   :  { %v471_v56 = vpop.f32.mrf.mxu1  ;;  %v227_v57 = vpop.f32.mrf.mxu0 }
 0x11e   :  { %369 = vst [vmem:[#allocation7 + $0xb8] sm:$0xff] %v338_v54  ;;  %367 = vst [vmem:[#allocation7 + $0xa8] sm:$0xff] %v226_v55  ;;  %v228_v58 = vadd.f32 %v227_v57, %v638_v4 }
 0x11f   :  { %v342_v59 = vpop.f32.mrf.mxu1  ;;  %v231_v60 = vpop.f32.mrf.mxu0 }
 0x120   :  { %v343_v61 = vadd.f32 %v342_v59, %v634_v1  ;;  %368 = vst [vmem:[#allocation7 + $0xb0] sm:$0xff] %v228_v58  ;;  %v232_v62 = vadd.f32 %v231_v60, %v636_v2 }
 0x121   :  { %v474_v63 = vpop.f32.mrf.mxu1  ;;  %v233_v3 = vpop.f32.mrf.mxu0 }
 0x122   :  { %372 = vst [vmem:[#allocation7 + $0xd0] sm:$0xff] %v343_v61  ;;  %370 = vst [vmem:[#allocation7 + $0xc0] sm:$0xff] %v232_v62  ;;  %v234_v5 = vadd.f32 %v233_v3, %v638_v4 }
 0x124   :  { %371 = vst [vmem:[#allocation7 + $0xc8] sm:$0xff] %v234_v5 }
 0x125   :  { %535 = shalt.err (!%p532_p0)
}
 0x126   :  { %384 = dma.vmem_to_hbm [thread:$0]  %s379_s26, 3456, %s676_s3, [#allocation4], %s554_s22, %s554_s22, %s555_s23  }
 0x127   :  { %548 = dma.done.wait [#allocation4], 3456  }
 0x128   :  { %549 = vsyncadd [#allocation4], 4294963840 }
 0x129   :  { %388 = vsyncpa [#allocation3], 1 }
 0x12a   :  { %389 = vsyncpa [#allocation6], 1 }
 0x12b   :  { %390 = vsyncpa [#allocation4], 1 }

</bundles_post_ra>
